<compile_context>
chip_gen: v5e
topology: v5e:2x2
jax: 0.10.0
libtpu: 0.0.40
codegen_flags: <defaults>
</compile_context>

<pallas_src>
import jax
import jax.numpy as jnp
import numpy as np
from jax.experimental import pallas as pl
from jax.experimental.pallas import tpu as pltpu

_LANES = 128
_SUBLANES = 8


def _gkl_kernel(mu1_ref, lv1_ref, mu2_ref, lv2_ref, out_ref, acc_ref):
    # Zero the resident accumulator on the first grid step.
    @pl.when(pl.program_id(0) == 0)
    def _init():
        acc_ref[...] = jnp.zeros_like(acc_ref)

    mu1 = mu1_ref[...].astype(jnp.float32)
    lv1 = lv1_ref[...].astype(jnp.float32)
    mu2 = mu2_ref[...].astype(jnp.float32)
    lv2 = lv2_ref[...].astype(jnp.float32)

    diff = mu1 - mu2
    # fraction = (exp(lv1) + diff^2) / exp(lv2) == exp(lv1-lv2) + diff^2*exp(-lv2)
    term = (lv2 - lv1) + jnp.exp(lv1 - lv2) + diff * diff * jnp.exp(-lv2)
    acc_ref[...] += term  # VPU-only hot loop; no per-step XLU reduce.

    # Single epilogue reduce + scalar write on the last grid step.
    @pl.when(pl.program_id(0) == pl.num_programs(0) - 1)
    def _finalize():
        out_ref[0] = jnp.sum(acc_ref[...])


def _round_up(x, m):
    return ((x + m - 1) // m) * m


def gaussian_kl_loss(mu1, logvar1, mu2, logvar2, *, max_block_rows=2048):
    """Pallas implementation of GaussianKLLoss.forward. Returns a scalar."""
    assert mu1.shape == logvar1.shape == mu2.shape == logvar2.shape
    assert mu1.ndim == 2, "expected (batch, feature) inputs"
    B, D = mu1.shape
    total = B * D

    # Lane-dense flattening: total elements -> (padded_rows, 128).
    rows = pl.cdiv(total, _LANES)
    block_rows = min(_round_up(rows, _SUBLANES),
                     _round_up(max_block_rows, _SUBLANES))
    n_blocks = pl.cdiv(rows, block_rows)
    padded_rows = n_blocks * block_rows
    n_pad = padded_rows * _LANES - total  # each zero-pad element adds exactly 1.0

    def prep(x):
        x = x.reshape(-1)  # keep HBM dtype (bf16 stays bf16); kernel upcasts
        if n_pad:
            x = jnp.concatenate([x, jnp.zeros((n_pad,), x.dtype)])
        return x.reshape(padded_rows, _LANES)

    block_spec = pl.BlockSpec((block_rows, _LANES), lambda i: (i, 0))

    # TODO(synk): optional leading "parallel" grid axis to shard the stream
    # across v7x's two TensorCores (two partial sums added in the wrapper).
    acc_sum = pl.pallas_call(
        _gkl_kernel,
        out_shape=jax.ShapeDtypeStruct((1,), jnp.float32),
        grid_spec=pltpu.PrefetchScalarGridSpec(
            num_scalar_prefetch=0,
            grid=(n_blocks,),
            in_specs=[block_spec, block_spec, block_spec, block_spec],
            out_specs=pl.BlockSpec(
                (1,), lambda i: (0,), memory_space=pltpu.MemorySpace.SMEM),
            scratch_shapes=[pltpu.VMEM((block_rows, _LANES), jnp.float32)],
        ),
        compiler_params=pltpu.CompilerParams(
            dimension_semantics=("arbitrary",),
            vmem_limit_bytes=32 * 1024 * 1024,
        ),
    )(prep(mu1), prep(logvar1), prep(mu2), prep(logvar2))[0]

    # Exact (static) corrections: per-element "-1" -> -0.5*D after the mean,
    # each zero-pad element contributed 1.0, and the 0.5/B scale.
    return (0.5 / B) * (acc_sum - float(n_pad)) - 0.5 * D


def gaussian_kl_loss_ref(mu1, logvar1, mu2, logvar2):
    """Pure-JAX reference (mirrors the PyTorch code 1:1)."""
    numerator = jnp.exp(logvar1) + jnp.square(mu1 - mu2)
    fraction = numerator / jnp.exp(logvar2)
    kl = 0.5 * jnp.sum(logvar2 - logvar1 + fraction - 1.0, axis=1)
    return jnp.mean(kl, axis=0)


if __name__ == "__main__":
    # GaussianKLLoss has no parameters; build deterministic inputs.
    B, D = 8, 32  # small (batch, hidden) consistent with the module's usage
    key = jax.random.PRNGKey(0)
    k1, k2, k3, k4 = jax.random.split(key, 4)
    mu1 = jax.random.normal(k1, (B, D), dtype=jnp.float32)
    logvar1 = 0.1 * jax.random.normal(k2, (B, D), dtype=jnp.float32)
    mu2 = jax.random.normal(k3, (B, D), dtype=jnp.float32)
    logvar2 = 0.1 * jax.random.normal(k4, (B, D), dtype=jnp.float32)

    out = jax.block_until_ready(gaussian_kl_loss(mu1, logvar1, mu2, logvar2))
    ref = gaussian_kl_loss_ref(mu1, logvar1, mu2, logvar2)
    np.testing.assert_allclose(np.asarray(out), np.asarray(ref),
                               rtol=1e-5, atol=1e-5)

    # Exercise the multi-block (gridded, padded, accumulator) path as well.
    B2, D2 = 16, 300
    k5, k6, k7, k8 = jax.random.split(jax.random.PRNGKey(1), 4)
    mu1b = jax.random.normal(k5, (B2, D2), dtype=jnp.float32)
    lv1b = 0.1 * jax.random.normal(k6, (B2, D2), dtype=jnp.float32)
    mu2b = jax.random.normal(k7, (B2, D2), dtype=jnp.float32)
    lv2b = 0.1 * jax.random.normal(k8, (B2, D2), dtype=jnp.float32)
    out2 = jax.block_until_ready(
        gaussian_kl_loss(mu1b, lv1b, mu2b, lv2b, max_block_rows=16))
    ref2 = gaussian_kl_loss_ref(mu1b, lv1b, mu2b, lv2b)
    np.testing.assert_allclose(np.asarray(out2), np.asarray(ref2),
                               rtol=2e-4, atol=1e-3)

    print("KERNEL_OK")
</pallas_src>

<mosaic_0001>
module attributes {stable_mosaic.version = 11 : i64} {
  func.func @_gkl_kernel(%arg0: i32, %arg1: memref<8x128xf32, #tpu.memory_space<vmem>>, %arg2: memref<8x128xf32, #tpu.memory_space<vmem>>, %arg3: memref<8x128xf32, #tpu.memory_space<vmem>>, %arg4: memref<8x128xf32, #tpu.memory_space<vmem>>, %arg5: memref<1xf32, #tpu.memory_space<smem>>, %arg6: memref<8x128xf32, #tpu.memory_space<vmem>>) attributes {dimension_semantics = [#tpu.dimension_semantics<arbitrary>], iteration_bounds = array<i64: 1>, scalar_prefetch = 0 : i64, scratch_operands = 1 : i64, tpu.core_type = #tpu.core_type<tc>, window_params = [{transform_indices = @transform_0, window_bounds = array<i64: 8, 128>}, {transform_indices = @transform_1, window_bounds = array<i64: 8, 128>}, {transform_indices = @transform_2, window_bounds = array<i64: 8, 128>}, {transform_indices = @transform_3, window_bounds = array<i64: 8, 128>}, {transform_indices = @transform_4, window_bounds = array<i64: 1>}]} {
    %c0_i32 = arith.constant 0 : i32
    %0 = arith.cmpi eq, %arg0, %c0_i32 : i32
    %1 = arith.extui %0 : i1 to i32
    %c0_i32_0 = arith.constant 0 : i32
    %2 = arith.cmpi ne, %1, %c0_i32_0 : i32
    scf.if %2 {
      %cst_14 = arith.constant 0.000000e+00 : f32
      %24 = vector.broadcast %cst_14 : f32 to vector<8x128xf32>
      %c0_15 = arith.constant 0 : index
      %c0_16 = arith.constant 0 : index
      %25 = vector.load %arg6[%c0_15, %c0_16] : memref<8x128xf32, #tpu.memory_space<vmem>>, vector<8x128xf32>
      tpu.vector_store %arg6[%c0_15, %c0_16], %24 {strides = array<i32>} : memref<8x128xf32, #tpu.memory_space<vmem>>, vector<8x128xf32>,
    } else {
    }
    %c0 = arith.constant 0 : index
    %c0_1 = arith.constant 0 : index
    %3 = vector.load %arg1[%c0, %c0_1] : memref<8x128xf32, #tpu.memory_space<vmem>>, vector<8x128xf32>
    %c0_2 = arith.constant 0 : index
    %c0_3 = arith.constant 0 : index
    %4 = vector.load %arg2[%c0_2, %c0_3] : memref<8x128xf32, #tpu.memory_space<vmem>>, vector<8x128xf32>
    %c0_4 = arith.constant 0 : index
    %c0_5 = arith.constant 0 : index
    %5 = vector.load %arg3[%c0_4, %c0_5] : memref<8x128xf32, #tpu.memory_space<vmem>>, vector<8x128xf32>
    %c0_6 = arith.constant 0 : index
    %c0_7 = arith.constant 0 : index
    %6 = vector.load %arg4[%c0_6, %c0_7] : memref<8x128xf32, #tpu.memory_space<vmem>>, vector<8x128xf32>
    %7 = arith.subf %3, %5 : vector<8x128xf32>
    %8 = arith.subf %6, %4 : vector<8x128xf32>
    %9 = arith.subf %4, %6 : vector<8x128xf32>
    %10 = math.exp %9 : vector<8x128xf32>
    %11 = arith.addf %8, %10 : vector<8x128xf32>
    %12 = arith.mulf %7, %7 : vector<8x128xf32>
    %cst = arith.constant 0.000000e+00 : f32
    %13 = vector.broadcast %cst : f32 to vector<8x128xf32>
    %14 = arith.subf %13, %6 : vector<8x128xf32>
    %15 = math.exp %14 : vector<8x128xf32>
    %16 = arith.mulf %12, %15 : vector<8x128xf32>
    %17 = arith.addf %11, %16 : vector<8x128xf32>
    %c0_8 = arith.constant 0 : index
    %c0_9 = arith.constant 0 : index
    %18 = vector.load %arg6[%c0_8, %c0_9] : memref<8x128xf32, #tpu.memory_space<vmem>>, vector<8x128xf32>
    %19 = arith.addf %18, %17 : vector<8x128xf32>
    %c0_10 = arith.constant 0 : index
    %c0_11 = arith.constant 0 : index
    %20 = vector.load %arg6[%c0_10, %c0_11] : memref<8x128xf32, #tpu.memory_space<vmem>>, vector<8x128xf32>
    tpu.vector_store %arg6[%c0_10, %c0_11], %19 {strides = array<i32>} : memref<8x128xf32, #tpu.memory_space<vmem>>, vector<8x128xf32>,
    %c0_i32_12 = arith.constant 0 : i32
    %21 = arith.cmpi eq, %arg0, %c0_i32_12 : i32
    %22 = arith.extui %21 : i1 to i32
    %c0_i32_13 = arith.constant 0 : i32
    %23 = arith.cmpi ne, %22, %c0_i32_13 : i32
    scf.if %23 {
      %c0_14 = arith.constant 0 : index
      %c0_15 = arith.constant 0 : index
      %24 = vector.load %arg6[%c0_14, %c0_15] : memref<8x128xf32, #tpu.memory_space<vmem>>, vector<8x128xf32>
      %25 = vector.shape_cast %24 : vector<8x128xf32> to vector<1x8x128xf32>
      %cst_16 = arith.constant dense<0.000000e+00> : vector<1xf32>
      %26 = vector.multi_reduction <add>, %25, %cst_16 [1, 2] : vector<1x8x128xf32> to vector<1xf32>
      %27 = vector.shape_cast %26 : vector<1xf32> to vector<1x1x1xf32>
      %28 = vector.extract %27[0, 0, 0] : f32 from vector<1x1x1xf32>
      %c0_17 = arith.constant 0 : index
      %29 = memref.load %arg5[%c0_17] : memref<1xf32, #tpu.memory_space<smem>>
      memref.store %28, %arg5[%c0_17] : memref<1xf32, #tpu.memory_space<smem>>
    } else {
    }
    return
  }
  func.func @transform_0(%arg0: i32) -> (i32, i32) {
    %c0_i32 = arith.constant 0 : i32
    %c0_i32_0 = arith.constant 0 : i32
    return %arg0, %c0_i32 : i32, i32
  }
  func.func @transform_1(%arg0: i32) -> (i32, i32) {
    %c0_i32 = arith.constant 0 : i32
    %c0_i32_0 = arith.constant 0 : i32
    return %arg0, %c0_i32 : i32, i32
  }
  func.func @transform_2(%arg0: i32) -> (i32, i32) {
    %c0_i32 = arith.constant 0 : i32
    %c0_i32_0 = arith.constant 0 : i32
    return %arg0, %c0_i32 : i32, i32
  }
  func.func @transform_3(%arg0: i32) -> (i32, i32) {
    %c0_i32 = arith.constant 0 : i32
    %c0_i32_0 = arith.constant 0 : i32
    return %arg0, %c0_i32 : i32, i32
  }
  func.func @transform_4(%arg0: i32) -> i32 {
    %c0_i32 = arith.constant 0 : i32
    %c0_i32_0 = arith.constant 0 : i32
    return %c0_i32 : i32
  }
}

</mosaic_0001>

<bundles_post_ra>
// kernel: tpu_custom_call.1
= control target key start
LH: loop header
LB: loop body
LE: loop exit
PB: predicated region body
PF: predicated region fallthrough
CT: control target
= control target key end

     0   :  { %9 = vsyncpa [#allocation4], 0  ;;  %s302_s0 = inlined_call_operand.hbm [shape: f32[8,128], index: 0, kind: input, shape index: {}]   ;;  %s303_s1 = inlined_call_operand.hbm [shape: f32[8,128], index: 1, kind: input, shape index: {}]   ;;  %s304_s2 = inlined_call_operand.hbm [shape: f32[8,128], index: 2, kind: input, shape index: {}]   ;;  %s305_s3 = inlined_call_operand.hbm [shape: f32[8,128], index: 3, kind: input, shape index: {}]   ;;  %s306_s4 = inlined_call_operand.hbm [shape: f32[1], index: 4, kind: output, shape index: {}]  }
   0x1   :  { %10 = vsyncpa [#allocation7], 0 }
   0x2   :  { %11 = vsyncpa [#allocation10], 0  ;;  %s29_s17 = sshll.u32 %s303_s1, 4  ;;  %s30_s17 = int_to_ptr.hbm [resolvable:$true] %s29_s17 }
   0x3   :  { %12 = vsyncpa [#allocation5], 0  ;;  %s257_s18 = smov [#allocation6]   ;;  %s18_s22 = sshll.u32 %s302_s0, 4  ;;  %s19_s22 = int_to_ptr.hbm [resolvable:$true] %s18_s22 }
   0x4   :  { %s31_s19 = sshll.u32 %s257_s18, 4  ;;  %s258_s23 = smov [#allocation3]   ;;  %s32_s19 = int_to_ptr.vmem [resolvable:$true] %s31_s19 }
   0x5   :  { %34 = dma.hbm_to_vmem [thread:$0]  %s30_s17, 128, %s32_s19, [#allocation7]  }
   0x6   :  { %s20_s24 = sshll.u32 %s258_s23, 4  ;;  %s40_s27 = sshll.u32 %s304_s2, 4  ;;  %s21_s24 = int_to_ptr.vmem [resolvable:$true] %s20_s24  ;;  %s41_s27 = int_to_ptr.hbm [resolvable:$true] %s40_s27 }
   0x7   :  { %23 = dma.hbm_to_vmem [thread:$0]  %s19_s22, 128, %s21_s24, [#allocation4]  }
   0x8   :  { %s51_s29 = sshll.u32 %s305_s3, 4  ;;  %s259_s30 = smov [#allocation8]   ;;  %s52_s29 = int_to_ptr.hbm [resolvable:$true] %s51_s29 }
   0x9   :  { %s42_s5 = sshll.u32 %s259_s30, 4  ;;  %s260_s0 = smov [#allocation9]   ;;  %s43_s5 = int_to_ptr.vmem [resolvable:$true] %s42_s5 }
   0xa   :  { %45 = dma.hbm_to_vmem [thread:$0]  %s41_s27, 128, %s43_s5, [#allocation7]  }
   0xb   :  { %s53_s6 = sshll.u32 %s260_s0, 4  ;;  %s54_s6 = int_to_ptr.vmem [resolvable:$true] %s53_s6 }
   0xc   :  { %56 = dma.hbm_to_vmem [thread:$0]  %s52_s29, 128, %s54_s6, [#allocation10]  }
   0xd   :  { %249 = dma.done.wait [#allocation4], 128  }
   0xe   :  { %250 = vsyncadd [#allocation4], 4294967168 }
   0xf   :  { %251 = dma.done.wait [#allocation7], 256  }
  0x10   :  { %252 = vsyncadd [#allocation7], 4294967040 }
  0x11   :  { %253 = dma.done.wait [#allocation10], 128  }
  0x12   :  { %254 = vsyncadd [#allocation10], 4294967168  ;;  %v79_v0 = vld [vmem:[#allocation6] sm:$0xff]  ;;  %v81_v1 = vld [vmem:[#allocation9] sm:$0xff]  ;;  %s117_s7 = sshll.u32 %s306_s4, 4  ;;  %s261_s9 = smov [#allocation11]   ;;  %s118_s7 = int_to_ptr.hbm [resolvable:$true] %s117_s7 }
  0x13   :  { %v84_v2 = vsub.f32 %v79_v0, %v81_v1  ;;  %v89_v3 = vsub.f32 0.0, %v81_v1  ;;  %v78_v4 = vld [vmem:[#allocation3] sm:$0xff]  ;;  %v80_v5 = vld [vmem:[#allocation8] sm:$0xff]  ;;  %v83_v9 = vsub.f32 %v81_v1, %v79_v0 }
  0x14   :  { %v82_v8 = vsub.f32 %v78_v4, %v80_v5 }
  0x15   :  { %v85_v6 = vmul.f32 1.442695, %v84_v2  ;;  %v90_v7 = vmul.f32 1.442695, %v89_v3 }
  0x16   :  { %v88_v10 = vmul.f32 %v82_v8, %v82_v8 }
  0x17   :  { %137 = vpow2.f32 %v85_v6 }
  0x18   :  { %139 = vpow2.f32 %v90_v7 }
  0x1d   :  { %v138_v11 = vpop.eup %137 }
  0x1e   :  { %v140_v12 = vpop.eup %139  ;;  %v87_v13 = vadd.f32 %v138_v11, %v83_v9 }
  0x1f   :  { %v92_v14 = vmul.f32 %v140_v12, %v88_v10 }
  0x21   :  { %v93_v15 = vadd.f32 %v92_v14, %v87_v13 }
  0x23   :  { %101 = vadd.xlane.f32.xlu0 %v93_v15 }
  0x96   :  { %v102_v16 = vpop.xlane.xlu0 %101 }
  0x97   :  { %v103_v17 = vrot.slane %v102_v16, 4 }
  0x99   :  { %v104_v18 = vadd.f32 %v103_v17, %v102_v16 }
  0x9b   :  { %v105_v19 = vrot.slane %v104_v18, 2 }
  0x9d   :  { %v106_v20 = vadd.f32 %v105_v19, %v104_v18 }
  0x9f   :  { %v107_v21 = vrot.slane %v106_v20, 1 }
  0xa1   :  { %v108_v22 = vadd.f32 %v107_v21, %v106_v20 }
  0xa3   :  { %130 = vpush %v108_v22 }
  0xd4   :  { %s131_s8 = spop %130 }
  0xd5   :  { %111 = sst [smem:[#allocation11]] %s131_s8 }
  0xd6   :  { %120 = dma.smem_to_hbm %s261_s9, 16, %s118_s7, [#allocation5]  }
  0xd7   :  { %255 = dma.done.wait [#allocation5], 16  }
  0xd8   :  { %256 = vsyncadd [#allocation5], 4294967280 }
  0xd9   :  { %125 = sfence }
  0xda   :  { %126 = vsyncpa [#allocation4], 1 }
  0xdb   :  { %127 = vsyncpa [#allocation7], 1 }
  0xdc   :  { %128 = vsyncpa [#allocation10], 1 }
  0xdd   :  { %129 = vsyncpa [#allocation5], 1 }

</bundles_post_ra>
